<compile_context>
chip_gen: v7x
topology: tpu7x:2x2x1
jax: 0.10.0
libtpu: 0.0.40
codegen_flags: <defaults>
</compile_context>

<pallas_src>
import functools
import math

import jax
import jax.numpy as jnp
from jax.experimental import pallas as pl
from jax.experimental.pallas import tpu as pltpu


def _round_up(n, m):
    return ((n + m - 1) // m) * m


def _penalty_norm_kernel(x_ref, out_ref, acc_ref, *, norm, rows, tile_r):
    """Accumulates per-sample l1/l2 norm partials into one (8, 128) vreg."""
    r = pl.program_id(1)
    n_tiles = (rows + tile_r - 1) // tile_r          # static
    last = n_tiles - 1                               # static

    @pl.when(r == 0)
    def _():
        acc_ref[...] = jnp.zeros_like(acc_ref)

    # Upcast on the VPU (hidden under DMA) so HBM traffic stays native-width.
    x = x_ref[0].astype(jnp.float32)                             # (tile_r, 128)
    contrib = jnp.abs(x) if norm == "l1" else x * x

    def _fold(c):
        # Cross-vreg VALU tree: (tile_r, 128) -> (8, 128), no XLU.
        return c.reshape(tile_r // 8, 8, 128).sum(axis=0)

    if rows % tile_r != 0:
        # Ragged row count: only the last tile reads past the array and needs
        # masking; all full tiles take the cheap unmasked path.
        valid_last = rows - last * tile_r            # static, 0 < valid_last < tile_r

        @pl.when(r != last)
        def _():
            acc_ref[...] += _fold(contrib)

        @pl.when(r == last)
        def _():
            row_ids = jax.lax.broadcasted_iota(jnp.int32, (tile_r, 128), 0)
            masked = jnp.where(row_ids < valid_last, contrib, 0.0)
            acc_ref[...] += _fold(masked)
    else:
        acc_ref[...] += _fold(contrib)

    @pl.when(r == last)
    def _():
        # Full unmasked (8, 128) vreg store; lane/sublane reduce happens in
        # the wrapper epilogue.
        out_ref[...] = acc_ref[...][None]


def penalty_prior_ref(x, *, margin=1.0, norm="l2", epsilon=1e-7):
    """Pure-JAX reference mirroring the PyTorch forward (use_vector=True)."""
    batch = x.shape[0]
    x2d = x.reshape(batch, -1).astype(jnp.float32)
    if norm == "l1":
        param_norm = jnp.sum(jnp.abs(x2d), axis=-1)
        eff_margin = margin
    else:
        param_norm = jnp.sum(x2d ** 2, axis=-1)
        eff_margin = margin ** 2
    thresholded = jax.nn.relu(param_norm - eff_margin)
    non_zeros = jnp.sum((thresholded > 0).astype(jnp.float32)) + epsilon
    return jnp.sum(thresholded) / non_zeros


def penalty_prior(x, *, margin=1.0, norm="l2", epsilon=1e-7,
                  block_bytes=4 * 1024 * 1024, tile_rows=None,
                  min_pallas_bytes=512 * 1024, force_pallas=False):
    """Pallas implementation of PenaltyPrior.forward (use_vector=True)."""
    assert norm in ("l1", "l2")
    batch = x.shape[0]
    d = math.prod(x.shape[1:])
    itemsize = jnp.dtype(x.dtype).itemsize

    # Small-input fast path: pallas_call dispatch + per-step overhead would
    # dominate for tiny parameter tensors; let XLA fuse the reduction.
    if not force_pallas and d * batch * itemsize < min_pallas_bytes:
        return penalty_prior_ref(x, margin=margin, norm=norm, epsilon=epsilon)

    # Lane-pack features: (B, rows, 128), native dtype (no wrapper-side cast).
    rem = (-d) % 128
    rows = (d + rem) // 128
    if rem:
        # Only the <128-element per-sample remainder is padded (zeros are
        # neutral for both the l1 and the l2 norm).
        x3d = jnp.pad(x.reshape(batch, d), ((0, 0), (0, rem))).reshape(
            batch, rows, 128)
    else:
        x3d = x.reshape(batch, rows, 128)

    # Sublane granularity: 8 for 32-bit, 16 for bf16, 32 for 8-bit dtypes.
    sub = max(8, 32 // itemsize)
    if tile_rows is None:
        # Fixed byte budget per DMA block so streaming efficiency is constant
        # across dtypes (f32 -> 8192 rows, bf16 -> 16384, int8 -> 32768).
        tile_rows = max(sub, block_bytes // (128 * itemsize))
    tile_r = min(_round_up(tile_rows, sub), _round_up(rows, sub))
    n_row_tiles = pl.cdiv(rows, tile_r)

    kernel = functools.partial(
        _penalty_norm_kernel, norm=norm, rows=rows, tile_r=tile_r)

    partial_sums = pl.pallas_call(
        kernel,
        out_shape=jax.ShapeDtypeStruct((batch, 8, 128), jnp.float32),
        grid_spec=pltpu.PrefetchScalarGridSpec(
            num_scalar_prefetch=0,
            grid=(batch, n_row_tiles),
            in_specs=[pl.BlockSpec((1, tile_r, 128), lambda b, r: (b, r, 0))],
            out_specs=pl.BlockSpec((1, 8, 128), lambda b, r: (b, 0, 0)),
            scratch_shapes=[pltpu.VMEM((8, 128), jnp.float32)],
        ),
        compiler_params=pltpu.CompilerParams(
            dimension_semantics=("parallel", "arbitrary"),
        ),
    )(x3d)

    # Tiny epilogue on (B, 8*128): final reduce + relu-threshold + count +
    # mean (done in the wrapper so the batch grid axis stays parallel).
    param_norm = jnp.sum(partial_sums.reshape(batch, 8 * 128), axis=-1)  # (B,)
    eff_margin = float(margin) if norm == "l1" else float(margin) ** 2
    thresholded = jnp.maximum(param_norm - eff_margin, 0.0)
    non_zeros = jnp.sum((thresholded > 0.0).astype(jnp.float32)) + epsilon
    return jnp.sum(thresholded) / non_zeros


if __name__ == "__main__":
    key = jax.random.PRNGKey(0)
    k0, k1, k2 = jax.random.split(key, 3)

    # Small shape consistent with a parameter tensor fed to the prior.
    x = jax.random.normal(k0, (2, 4, 16, 16), dtype=jnp.float32)

    # Force the Pallas path (the default wrapper would take the small-input
    # fast path for these tiny test shapes).
    out_l2 = jax.block_until_ready(
        penalty_prior(x, margin=1.0, norm="l2", force_pallas=True))
    ref_l2 = penalty_prior_ref(x, margin=1.0, norm="l2")
    assert jnp.allclose(out_l2, ref_l2, rtol=1e-5, atol=1e-4), (out_l2, ref_l2)

    out_l1 = jax.block_until_ready(
        penalty_prior(x, margin=1.0, norm="l1", force_pallas=True))
    ref_l1 = penalty_prior_ref(x, margin=1.0, norm="l1")
    assert jnp.allclose(out_l1, ref_l1, rtol=1e-5, atol=1e-4), (out_l1, ref_l1)

    # Ragged feature count (D not a multiple of 128) exercises the minimal
    # remainder pad + gated last-tile row mask.
    y = jax.random.normal(k1, (2, 3, 40, 40), dtype=jnp.float32)
    out_r = jax.block_until_ready(
        penalty_prior(y, margin=1.0, norm="l2", force_pallas=True))
    ref_r = penalty_prior_ref(y, margin=1.0, norm="l2")
    assert jnp.allclose(out_r, ref_r, rtol=1e-5, atol=1e-4), (out_r, ref_r)

    # bf16 input with a small forced tile: exercises multiple row tiles, the
    # unmasked full-tile path AND the masked partial last tile, plus the
    # in-kernel dtype upcast.
    z = jax.random.normal(k2, (2, 50, 128), dtype=jnp.float32).astype(
        jnp.bfloat16)
    out_z = jax.block_until_ready(
        penalty_prior(z, margin=1.0, norm="l2", tile_rows=16,
                      force_pallas=True))
    ref_z = penalty_prior_ref(z, margin=1.0, norm="l2")
    assert jnp.allclose(out_z, ref_z, rtol=1e-4, atol=1e-2), (out_z, ref_z)

    # Default call on a tiny tensor takes the fast path (pure-JAX reduction).
    out_fast = jax.block_until_ready(penalty_prior(x, margin=1.0, norm="l2"))
    assert jnp.allclose(out_fast, ref_l2, rtol=1e-5, atol=1e-4)

    print("KERNEL_OK")
</pallas_src>

<mosaic_0001>
module attributes {stable_mosaic.version = 11 : i64} {
  func.func @_penalty_norm_kernel(%arg0: i32, %arg1: i32, %arg2: memref<1x8x128xf32, #tpu.memory_space<vmem>>, %arg3: memref<1x8x128xf32, #tpu.memory_space<vmem>>, %arg4: memref<8x128xf32, #tpu.memory_space<vmem>>) attributes {dimension_semantics = [#tpu.dimension_semantics<parallel>, #tpu.dimension_semantics<arbitrary>], iteration_bounds = array<i64: 2, 1>, scalar_prefetch = 0 : i64, scratch_operands = 1 : i64, tpu.core_type = #tpu.core_type<tc>, window_params = [{transform_indices = @transform_0, window_bounds = array<i64: 1, 8, 128>}, {transform_indices = @transform_1, window_bounds = array<i64: 1, 8, 128>}]} {
    %c0_i32 = arith.constant 0 : i32
    %0 = arith.cmpi eq, %arg1, %c0_i32 : i32
    %1 = arith.extui %0 : i1 to i32
    %c0_i32_0 = arith.constant 0 : i32
    %2 = arith.cmpi ne, %1, %c0_i32_0 : i32
    scf.if %2 {
      %cst_9 = arith.constant 0.000000e+00 : f32
      %14 = vector.broadcast %cst_9 : f32 to vector<8x128xf32>
      %c0_10 = arith.constant 0 : index
      %c0_11 = arith.constant 0 : index
      %15 = vector.load %arg4[%c0_10, %c0_11] : memref<8x128xf32, #tpu.memory_space<vmem>>, vector<8x128xf32>
      tpu.vector_store %arg4[%c0_10, %c0_11], %14 {strides = array<i32>} : memref<8x128xf32, #tpu.memory_space<vmem>>, vector<8x128xf32>,
    } else {
    }
    %c0 = arith.constant 0 : index
    %c0_1 = arith.constant 0 : index
    %c0_2 = arith.constant 0 : index
    %3 = vector.load %arg2[%c0, %c0_1, %c0_2] : memref<1x8x128xf32, #tpu.memory_space<vmem>>, vector<1x8x128xf32>
    %4 = vector.shape_cast %3 : vector<1x8x128xf32> to vector<8x128xf32>
    %5 = arith.mulf %4, %4 : vector<8x128xf32>
    %c0_3 = arith.constant 0 : index
    %c0_4 = arith.constant 0 : index
    %6 = vector.load %arg4[%c0_3, %c0_4] : memref<8x128xf32, #tpu.memory_space<vmem>>, vector<8x128xf32>
    %7 = vector.shape_cast %5 : vector<8x128xf32> to vector<1x8x128xf32>
    %cst = arith.constant dense<0.000000e+00> : vector<8x128xf32>
    %8 = vector.multi_reduction <add>, %7, %cst [0] : vector<1x8x128xf32> to vector<8x128xf32>
    %9 = arith.addf %6, %8 : vector<8x128xf32>
    %c0_5 = arith.constant 0 : index
    %c0_6 = arith.constant 0 : index
    %10 = vector.load %arg4[%c0_5, %c0_6] : memref<8x128xf32, #tpu.memory_space<vmem>>, vector<8x128xf32>
    tpu.vector_store %arg4[%c0_5, %c0_6], %9 {strides = array<i32>} : memref<8x128xf32, #tpu.memory_space<vmem>>, vector<8x128xf32>,
    %c0_i32_7 = arith.constant 0 : i32
    %11 = arith.cmpi eq, %arg1, %c0_i32_7 : i32
    %12 = arith.extui %11 : i1 to i32
    %c0_i32_8 = arith.constant 0 : i32
    %13 = arith.cmpi ne, %12, %c0_i32_8 : i32
    scf.if %13 {
      %c0_9 = arith.constant 0 : index
      %c0_10 = arith.constant 0 : index
      %14 = vector.load %arg4[%c0_9, %c0_10] : memref<8x128xf32, #tpu.memory_space<vmem>>, vector<8x128xf32>
      %15 = vector.shape_cast %14 : vector<8x128xf32> to vector<1x8x128xf32>
      %c0_11 = arith.constant 0 : index
      %c0_12 = arith.constant 0 : index
      %c0_13 = arith.constant 0 : index
      %16 = vector.load %arg3[%c0_11, %c0_12, %c0_13] : memref<1x8x128xf32, #tpu.memory_space<vmem>>, vector<1x8x128xf32>
      tpu.vector_store %arg3[%c0_11, %c0_12, %c0_13], %15 {strides = array<i32>} : memref<1x8x128xf32, #tpu.memory_space<vmem>>, vector<1x8x128xf32>,
    } else {
    }
    return
  }
  func.func @transform_0(%arg0: i32, %arg1: i32) -> (i32, i32, i32) {
    %c0_i32 = arith.constant 0 : i32
    %c0_i32_0 = arith.constant 0 : i32
    return %arg0, %arg1, %c0_i32 : i32, i32, i32
  }
  func.func @transform_1(%arg0: i32, %arg1: i32) -> (i32, i32, i32) {
    %c0_i32 = arith.constant 0 : i32
    %c0_i32_0 = arith.constant 0 : i32
    %c0_i32_1 = arith.constant 0 : i32
    return %arg0, %c0_i32, %c0_i32_0 : i32, i32, i32
  }
}

</mosaic_0001>

<bundles_post_ra>
// kernel: tpu_custom_call.1
= control target key start
LH: loop header
LB: loop body
LE: loop exit
PB: predicated region body
PF: predicated region fallthrough
CT: control target
= control target key end

     0   :  { %6 = vsyncpa [#allocation4], 0  ;;  %s629_s0 = inlined_call_operand.hbm [shape: f32[2,8,128], index: 0, kind: input, shape index: {}]   ;;  %s630_s1 = inlined_call_operand.hbm [shape: f32[2,8,128], index: 1, kind: output, shape index: {}]  }
   0x1   :  { %8 = vsyncpa [#allocation4 + $0x1], 0 }
   0x2   :  { %9 = vsyncpa [#allocation5], 0 }
   0x3   :  { %11 = vsyncpa [#allocation5 + $0x1], 0  ;;  %s457_s6 = smov 0   ;;  %s459_s7 = smov 0  }
   0x4   :  { %s461_s8 = smov 0   ;;  %s463_s9 = smov 0  }
   0x5   :  { %s465_s10 = smov 0   ;;  %s467_s11 = smov 0  }
   0x6 LB: > { %s256_s12 = sadd.s32 4294967295, %s443_s11   ;;  %s257_s13 = sadd.s32 4294967294, %s443_s11   ;;  %s443_s11 = sphi %s467_s11, %s17_s11   ;;  %s439_s10 = sphi %s465_s10, %s646_s10   ;;  %s435_s9 = sphi %s463_s9, %s645_s9   ;;  %s431_s8 = sphi %s461_s8, %s644_s8   ;;  %s427_s7 = sphi %s459_s7, %s643_s7   ;;  %s423_s6 = sphi %s457_s6, %s642_s6  }
   0x7   : > { %s29_s14 = sadd.s32 1, %s439_s10  ;;  %s38_s15 = sadd.s32 1, %s431_s8 }
   0x8   : > { %p31_p0 = scmp.ge.s32.totalorder %s29_s14, 2  ;;  %p45_p1 = scmp.ne.s32.totalorder %s431_s8, %s427_s7 }
   0x9   : > { %p46_p2 = scmp.eq.s32.totalorder %s443_s11, 0  ;;  %p51_p3 = scmp.ne.s32.totalorder %s427_s7, %s423_s6 }
   0xa   : > { %s648_s14 = smov (%p31_p0, %s29_s14), 0  ;;  %p52_p5 = scmp.eq.s32.totalorder %s256_s12, 0 }
   0xb   : > { %p498_p4 = por %p46_p2, %p45_p1  ;;  %s33_s17 = ssub.s32 %s439_s10, %s648_s14 }
   0xc   : > { %p75_p6 = scmp.eq.s32.totalorder %s256_s12, 1  ;;  %p36_p7 = scmp.eq.s32.totalorder %s33_s17, 0 }
   0xd   : > { %p504_p8 = por %p52_p5, %p51_p3  ;;  %p81_p10 = scmp.eq.s32.totalorder %s257_s13, 1 }
   0xe   : > { %p508_p9 = por %p75_p6, %p45_p1  ;;  %p281_p13 = scmp.lt.s32.totalorder %s443_s11, 2 }
   0xf   : > { %s513_s20 = scalar_select %p36_p7, %s431_s8, %s38_s15  }
  0x10   : > { %s634_s19 = scalar_select %p508_p9, 1, 0 }
  0x11   : > { %p515_p11 = por %p81_p10, %p51_p3  ;;  %s101_s22 = sand.u32 1, %s431_s8  }
  0x12   : > { %s260_s23 = sshll.u32 %s101_s22, 3  ;;  %s261_s24 = sshll.u32 %s439_s10, 7 }
  0x13   : > { %s635_s21 = scalar_select %p515_p11, 1, 0 }
  0x14   : > { %s526_s27 = scalar_lea.hbm %s629_s0, %s261_s24  ;;  %s105_s28 = scalar_lea.vmem [#allocation3], %s260_s23 }
  0x15   : > { %s113_s29 = sshll.u32 %s105_s28, 4  ;;  %p532_p0 = pnand %p281_p13, %p498_p4  ;;  %s528_s29 = int_to_ptr.vmem [resolvable:$true] %s113_s29 }
  0x16   : > { %s102_s2 = scalar_lea.sflag [#allocation4], %s101_s22  ;;  %s331_s3 = scalar_lea.hbm %s526_s27, 128 }
  0x17   : > { %p332_p3 = scmp.ne.s32.totalorder %s526_s27, %s331_s3  ;;  %p333_p5 = pneg %p532_p0 }
  0x18   : > { %s336_s12 = scalar_lea.hbm %s629_s0, 256  ;;  %p337_p4 = scmp.lt.u32.totalorder %s526_s27, %s629_s0 }
  0x19   : > { %p334_p6 = pnand %p333_p5, %p332_p3  ;;  %p338_p10 = scmp.lt.u32.totalorder %s336_s12, %s331_s3 }
  0x1a   : > { %p340_p12 = scmp.lt.u32.totalorder %s331_s3, %s526_s27 }
  0x1b   : > { %p335_p7 = pneg %p334_p6  ;;  %p339_p13 = por %p338_p10, %p337_p4 }
  0x1d   : > { %p341_p1 = por %p340_p12, %p339_p13 }
  0x1f   : > { %p342_p2 = pnand %p341_p1, %p335_p7 }
  0x21   : > { %345 = shalt.err (!%p342_p2)
}
  0x22   : > { %s346_s16 = scalar_lea.vmem %s528_s29, 128  ;;  %s445_s17 = smov [#allocation3]  }
  0x23   : > { %p347_p3 = scmp.ne.s32.totalorder %s528_s29, %s346_s16  ;;  %s351_s22 = sshll.u32 %s445_s17, 4  ;;  %s352_s22 = int_to_ptr.vmem [resolvable:$false] %s351_s22 }
  0x24   : > { %s353_s23 = scalar_lea.vmem %s352_s22, 256  ;;  %p354_p9 = scmp.lt.s32.totalorder %s528_s29, %s352_s22 }
  0x25   : > { %p349_p6 = pnand %p347_p3, %p333_p5  ;;  %p355_p4 = scmp.lt.s32.totalorder %s353_s23, %s346_s16 }
  0x27   : > { %p350_p11 = pneg %p349_p6  ;;  %p356_p10 = por %p355_p4, %p354_p9 }
  0x29   : > { %p357_p12 = pnand %p356_p10, %p350_p11 }
  0x2b   : > { %360 = shalt.err (!%p357_p12)
}
  0x2c   : > { %276 = dma.hbm_to_vmem [thread:$0]  (!%p532_p0), %s526_s27, 128, %s528_s29, %s102_s2  }
  0x2d   : > { %p637_p1 = scmp.lt.s32.totalorder %s443_s11, 3  ;;  %p638_p2 = scmp.ge.s32.totalorder %s443_s11, 1 }
  0x2f   : > { %p119_p5 = pnand %p638_p2, %p637_p1 }
  0x30   : > { %s568_s24 = sand.u32 (!%p119_p5), 1, %s427_s7  }
  0x31   : > { %122 = sbr.rel (%p119_p5) target bundleno = 83 (0x53), region = 24  ;;  %s263_s25 = sshll.u32 (!%p119_p5), %s568_s24, 3 }
  0x32   : > { %s125_s26 = scalar_lea.sflag (!%p119_p5), [#allocation4], %s568_s24  ;;  %s128_s28 = scalar_lea.vmem (!%p119_p5), [#allocation3], %s263_s25 }
  0x38   : > { %414 = dma.done.wait (%p504_p8), %s125_s26, 128  }
  0x39   : > { %416 = vsyncadd (%p504_p8), %s125_s26, 4294967168  ;;  %s146_s27 = scalar_lea.vmem [#allocation6], %s263_s25  ;;  %s266_s30 = sshll.u32 %s435_s9, 7  ;;  %v152_v0 = vld [vmem:[%s128_s28] sm:$0xff] }
  0x3a   : > { %s177_s29 = sshll.u32 %s146_s27, 4  ;;  %v153_v1 = vmul.f32 %v152_v0, %v152_v0  ;;  %s582_s4 = scalar_lea.hbm %s630_s1, %s266_s30  ;;  %s577_s29 = int_to_ptr.vmem [resolvable:$true] %s177_s29 }
  0x3b   : > { %s164_s18 = scalar_lea.sflag [#allocation5], %s568_s24  ;;  %s361_s5 = scalar_lea.vmem %s577_s29, 128 }
  0x3c   : > { %162 = vst [vmem:[%s146_s27] sm:$0xff] %v153_v1  ;;  %p362_p8 = scmp.ne.s32.totalorder %s577_s29, %s361_s5  ;;  %p639_p9 = scmp.ne.s32.totalorder %s634_s19, 0 }
  0x3d   : > { %s446_s9 = smov [#allocation6]  }
  0x3e   : > { %p363_p11 = pnand %p362_p8, %p639_p9  ;;  %s365_s12 = sshll.u32 %s446_s9, 4  ;;  %s366_s12 = int_to_ptr.vmem [resolvable:$false] %s365_s12 }
  0x3f   : > { %s367_s13 = scalar_lea.vmem %s366_s12, 256  ;;  %p368_p7 = scmp.lt.s32.totalorder %s577_s29, %s366_s12 }
  0x40   : > { %p364_p0 = pneg %p363_p11  ;;  %p369_p13 = scmp.lt.s32.totalorder %s367_s13, %s361_s5 }
  0x42   : > { %p370_p3 = por %p369_p13, %p368_p7 }
  0x44   : > { %p371_p6 = pnand %p370_p3, %p364_p0 }
  0x46   : > { %374 = shalt.err (!%p371_p6)
}
  0x47   : > { %s375_s15 = scalar_lea.hbm %s582_s4, 128  ;;  %s379_s22 = scalar_lea.hbm %s630_s1, 256 }
  0x48   : > { %p376_p4 = scmp.ne.s32.totalorder %s582_s4, %s375_s15  ;;  %p380_p1 = scmp.lt.u32.totalorder %s582_s4, %s630_s1 }
  0x49   : > { %p381_p2 = scmp.lt.u32.totalorder %s379_s22, %s375_s15  ;;  %p383_p8 = scmp.lt.u32.totalorder %s375_s15, %s582_s4 }
  0x4a   : > { %p377_p10 = pnand %p376_p4, %p639_p9 }
  0x4b   : > { %p382_p5 = por %p381_p2, %p380_p1 }
  0x4c   : > { %p378_p12 = pneg %p377_p10 }
  0x4d   : > { %p384_p11 = por %p383_p8, %p382_p5 }
  0x4f   : > { %p385_p0 = pnand %p384_p11, %p378_p12 }
  0x51   : > { %388 = shalt.err (!%p385_p0)
}
  0x52   : > { %271 = dma.vmem_to_hbm [thread:$0]  (%p639_p9), %s577_s29, 128, %s582_s4, %s164_s18  }
  0x53 PF: > { %s189_s25 = sand.u32 1, %s423_s6   ;;  %p640_p7 = scmp.ne.s32.totalorder %s635_s21, 0 }
  0x54   : > { %p641_p13 = scmp.ge.s32.totalorder %s443_s11, 2  ;;  %s190_s26 = scalar_lea.sflag [#allocation5], %s189_s25 }
  0x56   : > { %p278_p3 = pnand %p641_p13, %p640_p7 }
  0x58   : > { %418 = dma.done.wait (!%p278_p3), %s190_s26, 128  }
  0x59   : > { %420 = vsyncadd (!%p278_p3), %s190_s26, 4294967168  ;;  %s17_s11 = sadd.s32 1, %s443_s11   ;;  %s642_s6 = smov %s427_s7 }
  0x5a   : > { %p14_p6 = scmp.ge.s32.totalorder %s17_s11, 4   ;;  %s643_s7 = smov %s431_s8 }
  0x5b   : > { %s644_s8 = smov %s513_s20  ;;  %s645_s9 = smov %s439_s10 }
  0x5c   : > { %s646_s10 = smov %s648_s14  ;;  %16 = sbr.rel (!%p14_p6) target bundleno = 6 (0x6), region = 77 }
  0x63   :  { %195 = vsyncpa [#allocation4], 1 }
  0x64   :  { %197 = vsyncpa [#allocation4 + $0x1], 1 }
  0x65   :  { %198 = vsyncpa [#allocation5], 1 }
  0x66   :  { %200 = vsyncpa [#allocation5 + $0x1], 1 }

</bundles_post_ra>
